<compile_context>
chip_gen: v6e
topology: v6e:2x2x1
jax: 0.10.0
libtpu: 0.0.40
codegen_flags: <defaults>
</compile_context>

<pallas_src>
import functools
import math

import jax
import jax.numpy as jnp
from jax import lax
from jax.experimental import pallas as pl
from jax.experimental.pallas import tpu as pltpu


def _layer_norm(v, w, b, eps=1e-5):
    # Two-pass (centered) variance: cheap over D and avoids the catastrophic
    # cancellation of E[x^2] - E[x]^2 when the residual has a large mean.
    mu = jnp.mean(v, axis=-1, keepdims=True)
    c = v - mu
    var = jnp.mean(c * c, axis=-1, keepdims=True)
    return c * lax.rsqrt(var + eps) * w + b


def encoder_kernel(
    x_ref,
    wqkv_ref, bqkv_ref,          # packed (D, 3D) / (1, 3D); Wq, bq pre-scaled
    wl_ref, bl_ref,              # head-major out-proj (H, dk, D) / (1, D)
    ln1w_ref, ln1b_ref,
    w1_ref, b1_ref, w2_ref, b2_ref,
    ln2w_ref, ln2b_ref,
    o_ref,
    *, num_heads,
):
    x = x_ref[0]                                   # (S, D) f32
    S, D = x.shape
    H = num_heads
    dk = D // H

    # Key padding mask, PyTorch semantics: (x == 0).any(-1) masks key positions.
    # Lane reduction to (S, 1), then a tiny (S,1)->(1,S) transpose.
    pad_q = jnp.max(jnp.where(x == 0.0, 1.0, 0.0), axis=-1, keepdims=True)   # (S, 1)
    pad_k = jnp.transpose(pad_q)                                             # (1, S)

    xb = x.astype(jnp.bfloat16)

    # Single lane-dense packed QKV projection (bf16 MXU operands, f32 acc).
    # Bias add + bf16 cast folded: the f32 projection is not kept live.
    qkv = (jnp.dot(xb, wqkv_ref[...], preferred_element_type=jnp.float32)
           + bqkv_ref[...]).astype(jnp.bfloat16)                            # (S, 3D)

    # Per-head attention with the output projection fused into the head
    # reduction: acc accumulates ctx_h @ Wl[h] in f32 on the MXU path.
    attn_acc = jnp.zeros((S, D), jnp.float32)
    for h in range(H):                              # static unroll, H is small
        qh = qkv[:, h * dk:(h + 1) * dk]            # (S, dk), already scaled
        kh = qkv[:, D + h * dk:D + (h + 1) * dk]
        vh = qkv[:, 2 * D + h * dk:2 * D + (h + 1) * dk]

        s = lax.dot_general(qh, kh, (((1,), (1,)), ((), ())),
                            preferred_element_type=jnp.float32)             # (S, S)
        s = jnp.where(pad_k > 0.5, jnp.float32(-1e9), s)                    # masked_fill
        m = jnp.max(s, axis=-1, keepdims=True)
        p = jnp.exp(s - m)
        denom = jnp.sum(p, axis=-1, keepdims=True)
        p = p * pl.reciprocal(denom, approx=True)                           # EUP slot

        ctx = jnp.dot(p.astype(jnp.bfloat16), vh,
                      preferred_element_type=jnp.float32)                   # (S, dk)
        attn_acc = attn_acc + jnp.dot(ctx.astype(jnp.bfloat16), wl_ref[h],
                                      preferred_element_type=jnp.float32)   # (S, D)

    attn_out = attn_acc + bl_ref[...]

    # Residual + LayerNorm 1
    h1 = _layer_norm(x + attn_out, ln1w_ref[...], ln1b_ref[...])

    # Position-wise feed-forward (bf16 MXU operands, f32 accumulation).
    # TODO(synk): tile d_ff here for large d_ff on v7x.
    ff = jnp.dot(h1.astype(jnp.bfloat16), w1_ref[...],
                 preferred_element_type=jnp.float32) + b1_ref[...]
    ff = jnp.maximum(ff, 0.0)
    ff = jnp.dot(ff.astype(jnp.bfloat16), w2_ref[...],
                 preferred_element_type=jnp.float32) + b2_ref[...]

    # Residual + LayerNorm 2
    o_ref[0] = _layer_norm(h1 + ff, ln2w_ref[...], ln2b_ref[...]).astype(o_ref.dtype)


# ---------------------------------------------------------------------------
# Wrapper: one-time weight packing / casts happen here (XLA side); the kernel
# never reshapes weights or broadcasts activations.
# ---------------------------------------------------------------------------

def _prepare_operands(params, num_heads):
    d_model = params["wq"].shape[0]
    dk = d_model // num_heads
    scale = 1.0 / math.sqrt(dk)
    bf16 = jnp.bfloat16
    # Fold the 1/sqrt(dk) attention scaling into Wq / bq (exactly equivalent).
    wqkv = jnp.concatenate(
        [params["wq"] * scale, params["wk"], params["wv"]], axis=1).astype(bf16)
    bqkv = jnp.concatenate(
        [params["bq"] * scale, params["bk"], params["bv"]], axis=1)
    # Out-projection split head-major: (D, D) -> (H, dk, D).
    wl = params["wl"].reshape(num_heads, dk, d_model).astype(bf16)
    return (
        wqkv, bqkv,
        wl, params["bl"],
        params["ln1w"], params["ln1b"],
        params["w1"].astype(bf16), params["b1"],
        params["w2"].astype(bf16), params["b2"],
        params["ln2w"], params["ln2b"],
    )


def _vmem_limit_bytes(S, D, d_ff, H):
    bf16, f32 = 2, 4
    weights = (4 * D * D + 2 * D * d_ff) * bf16
    biases = (9 * D + d_ff) * f32
    io_tiles = 2 * 2 * S * D * f32                 # x / out tiles, double-buffered
    acts = (S * 3 * D * (f32 + bf16)               # packed qkv (acc + bf16 copy)
            + 2 * S * S * f32                      # per-head scores + probabilities
            + 2 * S * D * f32                      # out-proj accumulator + residual
            + S * d_ff * f32)                      # FFN hidden activation
    est = weights + biases + io_tiles + acts
    try:  # per-generation clamp: use the chip's real VMEM capacity when known
        cap = int(getattr(pltpu.get_tpu_info(), "vmem_capacity_bytes", 64 << 20))
    except Exception:
        cap = 64 << 20
    return int(min(max(4 * est, 8 << 20), int(cap * 0.85)))


@functools.lru_cache(maxsize=None)
def _build_encoder_call(B, S, D, d_ff, H, out_dtype):
    dk = D // H

    def const_spec(shape):
        # Constant across the grid: Pallas skips the re-DMA when the block
        # index does not change, so default buffering is fine here.
        return pl.BlockSpec(shape, lambda b, _n=len(shape): (0,) * _n)

    in_specs = [pl.BlockSpec((1, S, D), lambda b: (b, 0, 0))] + [
        const_spec((D, 3 * D)), const_spec((1, 3 * D)),   # packed Wqkv / bqkv
        const_spec((H, dk, D)), const_spec((1, D)),       # Wl (head-major), bl
        const_spec((1, D)), const_spec((1, D)),           # ln1 w/b
        const_spec((D, d_ff)), const_spec((1, d_ff)),     # fc1
        const_spec((d_ff, D)), const_spec((1, D)),        # fc2
        const_spec((1, D)), const_spec((1, D)),           # ln2 w/b
    ]

    # TODO(synk): add a "parallel" query-tile grid axis (S // TQ) for v7x's two
    # TensorCores and flash-style key tiling for long sequences.
    return pl.pallas_call(
        functools.partial(encoder_kernel, num_heads=H),
        out_shape=jax.ShapeDtypeStruct((B, S, D), out_dtype),
        grid_spec=pltpu.PrefetchScalarGridSpec(
            num_scalar_prefetch=0,
            grid=(B,),
            in_specs=in_specs,
            out_specs=pl.BlockSpec((1, S, D), lambda b: (b, 0, 0)),
        ),
        compiler_params=pltpu.CompilerParams(
            dimension_semantics=("parallel",),
            vmem_limit_bytes=_vmem_limit_bytes(S, D, d_ff, H),
        ),
    )


def transformer_encoder_layer(x, params, num_heads):
    B, S, D = x.shape
    d_ff = params["w1"].shape[1]
    call = _build_encoder_call(B, S, D, d_ff, num_heads, x.dtype)
    return call(x, *_prepare_operands(params, num_heads))


# ---------------------------------------------------------------------------
# Pure-JAX reference mirroring the PyTorch forward pass (f32 end-to-end).
# ---------------------------------------------------------------------------

def reference_encoder_layer(x, params, num_heads):
    B, S, D = x.shape
    dk = D // num_heads
    mask = jnp.any(x == 0.0, axis=-1)[:, None, None, :]          # (B,1,1,S)

    def lin(v, w, b):
        return jnp.einsum("bsd,df->bsf", v, w) + b[0]

    q = lin(x, params["wq"], params["bq"]).reshape(B, S, num_heads, dk).transpose(0, 2, 1, 3)
    k = lin(x, params["wk"], params["bk"]).reshape(B, S, num_heads, dk).transpose(0, 2, 1, 3)
    v = lin(x, params["wv"], params["bv"]).reshape(B, S, num_heads, dk).transpose(0, 2, 1, 3)
    s = jnp.einsum("bhqd,bhkd->bhqk", q, k) / math.sqrt(dk)
    s = jnp.where(mask, -1e9, s)
    p = jax.nn.softmax(s, axis=-1)
    ctx = jnp.einsum("bhqk,bhkd->bhqd", p, v).transpose(0, 2, 1, 3).reshape(B, S, D)
    attn_out = lin(ctx, params["wl"], params["bl"])

    def ln(v, w, b, eps=1e-5):
        mu = jnp.mean(v, axis=-1, keepdims=True)
        var = jnp.mean((v - mu) ** 2, axis=-1, keepdims=True)
        return (v - mu) / jnp.sqrt(var + eps) * w[0] + b[0]

    h1 = ln(x + attn_out, params["ln1w"], params["ln1b"])
    ff = lin(jnp.maximum(lin(h1, params["w1"], params["b1"]), 0.0),
             params["w2"], params["b2"])
    return ln(h1 + ff, params["ln2w"], params["ln2b"])


def init_params(key, d_model, d_ff):
    keys = jax.random.split(key, 16)
    n = lambda k, shp, s=0.1: (jax.random.normal(k, shp, jnp.float32) * s)
    return {
        "wq": n(keys[0], (d_model, d_model)), "bq": n(keys[1], (1, d_model)),
        "wk": n(keys[2], (d_model, d_model)), "bk": n(keys[3], (1, d_model)),
        "wv": n(keys[4], (d_model, d_model)), "bv": n(keys[5], (1, d_model)),
        "wl": n(keys[6], (d_model, d_model)), "bl": n(keys[7], (1, d_model)),
        "ln1w": 1.0 + n(keys[8], (1, d_model)), "ln1b": n(keys[9], (1, d_model)),
        "w1": n(keys[10], (d_model, d_ff)), "b1": n(keys[11], (1, d_ff)),
        "w2": n(keys[12], (d_ff, d_model)), "b2": n(keys[13], (1, d_model)),
        "ln2w": 1.0 + n(keys[14], (1, d_model)), "ln2b": n(keys[15], (1, d_model)),
    }


if __name__ == "__main__":
    B, S, D, H, FF = 2, 8, 32, 4, 64
    key = jax.random.PRNGKey(0)
    kx, kp = jax.random.split(key)
    x = jax.random.normal(kx, (B, S, D), jnp.float32)
    x = x.at[1, S - 2:, :].set(0.0)          # padded positions exercise the mask path
    params = init_params(kp, D, FF)

    out = transformer_encoder_layer(x, params, num_heads=H)
    out = jax.block_until_ready(out)

    ref = reference_encoder_layer(x, params, num_heads=H)
    assert out.shape == (B, S, D)
    # bf16 MXU operands + approx reciprocal => loosened (but still tight) tolerance.
    assert jnp.allclose(out, ref, atol=5e-2, rtol=5e-2), "mismatch vs reference"

    print("KERNEL_OK")
</pallas_src>

<mosaic_0001>
module attributes {stable_mosaic.version = 11 : i64} {
  func.func @encoder_kernel(%arg0: i32, %arg1: memref<1x8x32xf32, #tpu.memory_space<vmem>>, %arg2: memref<32x96xbf16, #tpu.memory_space<vmem>>, %arg3: memref<1x96xf32, #tpu.memory_space<vmem>>, %arg4: memref<4x8x32xbf16, #tpu.memory_space<vmem>>, %arg5: memref<1x32xf32, #tpu.memory_space<vmem>>, %arg6: memref<1x32xf32, #tpu.memory_space<vmem>>, %arg7: memref<1x32xf32, #tpu.memory_space<vmem>>, %arg8: memref<32x64xbf16, #tpu.memory_space<vmem>>, %arg9: memref<1x64xf32, #tpu.memory_space<vmem>>, %arg10: memref<64x32xbf16, #tpu.memory_space<vmem>>, %arg11: memref<1x32xf32, #tpu.memory_space<vmem>>, %arg12: memref<1x32xf32, #tpu.memory_space<vmem>>, %arg13: memref<1x32xf32, #tpu.memory_space<vmem>>, %arg14: memref<1x8x32xf32, #tpu.memory_space<vmem>>) attributes {dimension_semantics = [#tpu.dimension_semantics<parallel>], iteration_bounds = array<i64: 2>, scalar_prefetch = 0 : i64, scratch_operands = 0 : i64, tpu.core_type = #tpu.core_type<tc>, window_params = [{transform_indices = @transform_0, window_bounds = array<i64: 1, 8, 32>}, {pipeline_mode = #tpu.pipeline_mode<synchronous>, transform_indices = @transform_1, window_bounds = array<i64: 32, 96>}, {pipeline_mode = #tpu.pipeline_mode<synchronous>, transform_indices = @transform_2, window_bounds = array<i64: 1, 96>}, {pipeline_mode = #tpu.pipeline_mode<synchronous>, transform_indices = @transform_3, window_bounds = array<i64: 4, 8, 32>}, {pipeline_mode = #tpu.pipeline_mode<synchronous>, transform_indices = @transform_4, window_bounds = array<i64: 1, 32>}, {pipeline_mode = #tpu.pipeline_mode<synchronous>, transform_indices = @transform_5, window_bounds = array<i64: 1, 32>}, {pipeline_mode = #tpu.pipeline_mode<synchronous>, transform_indices = @transform_6, window_bounds = array<i64: 1, 32>}, {pipeline_mode = #tpu.pipeline_mode<synchronous>, transform_indices = @transform_7, window_bounds = array<i64: 32, 64>}, {pipeline_mode = #tpu.pipeline_mode<synchronous>, transform_indices = @transform_8, window_bounds = array<i64: 1, 64>}, {pipeline_mode = #tpu.pipeline_mode<synchronous>, transform_indices = @transform_9, window_bounds = array<i64: 64, 32>}, {pipeline_mode = #tpu.pipeline_mode<synchronous>, transform_indices = @transform_10, window_bounds = array<i64: 1, 32>}, {pipeline_mode = #tpu.pipeline_mode<synchronous>, transform_indices = @transform_11, window_bounds = array<i64: 1, 32>}, {pipeline_mode = #tpu.pipeline_mode<synchronous>, transform_indices = @transform_12, window_bounds = array<i64: 1, 32>}, {transform_indices = @transform_13, window_bounds = array<i64: 1, 8, 32>}]} {
    %c0 = arith.constant 0 : index
    %c0_0 = arith.constant 0 : index
    %c0_1 = arith.constant 0 : index
    %0 = vector.load %arg1[%c0, %c0_0, %c0_1] : memref<1x8x32xf32, #tpu.memory_space<vmem>>, vector<1x8x32xf32>
    %1 = vector.shape_cast %0 : vector<1x8x32xf32> to vector<8x32xf32>
    %cst = arith.constant 0.000000e+00 : f32
    %2 = vector.broadcast %cst : f32 to vector<8x32xf32>
    %3 = arith.cmpf oeq, %1, %2 : vector<8x32xf32>
    %cst_2 = arith.constant 1.000000e+00 : f32
    %cst_3 = arith.constant 0.000000e+00 : f32
    %4 = vector.broadcast %cst_2 : f32 to vector<8x32xf32>
    %5 = vector.broadcast %cst_3 : f32 to vector<8x32xf32>
    %6 = arith.select %3, %4, %5 : vector<8x32xi1>, vector<8x32xf32>
    %cst_4 = arith.constant dense<0xFF800000> : vector<8xf32>
    %7 = vector.multi_reduction <maximumf>, %6, %cst_4 [1] : vector<8x32xf32> to vector<8xf32>
    %8 = vector.shape_cast %7 : vector<8xf32> to vector<8x1xf32>
    %9 = tpu.transpose %8, [1, 0] : vector<8x1xf32> -> vector<1x8xf32>
    %10 = arith.truncf %1 : vector<8x32xf32> to vector<8x32xbf16>
    %c0_5 = arith.constant 0 : index
    %c0_6 = arith.constant 0 : index
    %11 = vector.load %arg2[%c0_5, %c0_6] : memref<32x96xbf16, #tpu.memory_space<vmem>>, vector<32x96xbf16>
    %cst_7 = arith.constant dense<0.000000e+00> : vector<8x96xf32>
    %12 = tpu.matmul %10, %11, %cst_7 {dimension_numbers = #tpu.dot_dimension_numbers<[1], [0], [0], [1], [0, 0, 1, 1], [], []>} : vector<8x32xbf16>, vector<32x96xbf16>, vector<8x96xf32> -> vector<8x96xf32>
    %c0_8 = arith.constant 0 : index
    %c0_9 = arith.constant 0 : index
    %13 = vector.load %arg3[%c0_8, %c0_9] : memref<1x96xf32, #tpu.memory_space<vmem>>, vector<1x96xf32>
    %14 = vector.broadcast %13 : vector<1x96xf32> to vector<8x96xf32>
    %15 = arith.addf %12, %14 : vector<8x96xf32>
    %16 = arith.truncf %15 : vector<8x96xf32> to vector<8x96xbf16>
    %cst_10 = arith.constant 0.000000e+00 : f32
    %17 = vector.broadcast %cst_10 : f32 to vector<8x32xf32>
    %18 = vector.extract_strided_slice %16 {offsets = [0, 0], sizes = [8, 8], strides = [1, 1]} : vector<8x96xbf16> to vector<8x8xbf16>
    %19 = vector.extract_strided_slice %16 {offsets = [0, 32], sizes = [8, 8], strides = [1, 1]} : vector<8x96xbf16> to vector<8x8xbf16>
    %20 = vector.extract_strided_slice %16 {offsets = [0, 64], sizes = [8, 8], strides = [1, 1]} : vector<8x96xbf16> to vector<8x8xbf16>
    %cst_11 = arith.constant dense<0.000000e+00> : vector<8x8xf32>
    %21 = tpu.matmul %18, %19, %cst_11 {dimension_numbers = #tpu.dot_dimension_numbers<[1], [1], [0], [0], [0, 0, 1, 0], [], []>} : vector<8x8xbf16>, vector<8x8xbf16>, vector<8x8xf32> -> vector<8x8xf32>
    %cst_12 = arith.constant 5.000000e-01 : f32
    %22 = vector.broadcast %cst_12 : f32 to vector<1x8xf32>
    %23 = arith.cmpf ogt, %9, %22 : vector<1x8xf32>
    %cst_13 = arith.constant -1.000000e+09 : f32
    %24 = vector.shape_cast %23 : vector<1x8xi1> to vector<1x8xi1>
    %25 = vector.broadcast %24 : vector<1x8xi1> to vector<8x8xi1>
    %26 = vector.broadcast %cst_13 : f32 to vector<8x8xf32>
    %27 = arith.select %25, %26, %21 : vector<8x8xi1>, vector<8x8xf32>
    %cst_14 = arith.constant dense<0xFF800000> : vector<8xf32>
    %28 = vector.multi_reduction <maximumf>, %27, %cst_14 [1] : vector<8x8xf32> to vector<8xf32>
    %29 = vector.shape_cast %28 : vector<8xf32> to vector<8x1xf32>
    %30 = vector.broadcast %29 : vector<8x1xf32> to vector<8x8xf32>
    %31 = arith.subf %27, %30 : vector<8x8xf32>
    %32 = math.exp %31 : vector<8x8xf32>
    %cst_15 = arith.constant dense<0.000000e+00> : vector<8xf32>
    %33 = vector.multi_reduction <add>, %32, %cst_15 [1] : vector<8x8xf32> to vector<8xf32>
    %34 = vector.shape_cast %33 : vector<8xf32> to vector<8x1xf32>
    %35 = tpu.reciprocal %34 {approx = true} : vector<8x1xf32> -> vector<8x1xf32>
    %36 = vector.broadcast %35 : vector<8x1xf32> to vector<8x8xf32>
    %37 = arith.mulf %32, %36 : vector<8x8xf32>
    %38 = arith.truncf %37 : vector<8x8xf32> to vector<8x8xbf16>
    %cst_16 = arith.constant dense<0.000000e+00> : vector<8x8xf32>
    %39 = tpu.matmul %38, %20, %cst_16 {dimension_numbers = #tpu.dot_dimension_numbers<[1], [0], [0], [1], [0, 0, 1, 1], [], []>} : vector<8x8xbf16>, vector<8x8xbf16>, vector<8x8xf32> -> vector<8x8xf32>
    %40 = arith.truncf %39 : vector<8x8xf32> to vector<8x8xbf16>
    %c0_17 = arith.constant 0 : index
    %c0_18 = arith.constant 0 : index
    %c0_19 = arith.constant 0 : index
    %41 = vector.load %arg4[%c0_17, %c0_18, %c0_19] : memref<4x8x32xbf16, #tpu.memory_space<vmem>>, vector<1x8x32xbf16>
    %42 = vector.shape_cast %41 : vector<1x8x32xbf16> to vector<8x32xbf16>
    %cst_20 = arith.constant dense<0.000000e+00> : vector<8x32xf32>
    %43 = tpu.matmul %40, %42, %cst_20 {dimension_numbers = #tpu.dot_dimension_numbers<[1], [0], [0], [1], [0, 0, 1, 1], [], []>} : vector<8x8xbf16>, vector<8x32xbf16>, vector<8x32xf32> -> vector<8x32xf32>
    %44 = arith.addf %17, %43 : vector<8x32xf32>
    %45 = vector.extract_strided_slice %16 {offsets = [0, 8], sizes = [8, 8], strides = [1, 1]} : vector<8x96xbf16> to vector<8x8xbf16>
    %46 = vector.extract_strided_slice %16 {offsets = [0, 40], sizes = [8, 8], strides = [1, 1]} : vector<8x96xbf16> to vector<8x8xbf16>
    %47 = vector.extract_strided_slice %16 {offsets = [0, 72], sizes = [8, 8], strides = [1, 1]} : vector<8x96xbf16> to vector<8x8xbf16>
    %cst_21 = arith.constant dense<0.000000e+00> : vector<8x8xf32>
    %48 = tpu.matmul %45, %46, %cst_21 {dimension_numbers = #tpu.dot_dimension_numbers<[1], [1], [0], [0], [0, 0, 1, 0], [], []>} : vector<8x8xbf16>, vector<8x8xbf16>, vector<8x8xf32> -> vector<8x8xf32>
    %cst_22 = arith.constant 5.000000e-01 : f32
    %49 = vector.broadcast %cst_22 : f32 to vector<1x8xf32>
    %50 = arith.cmpf ogt, %9, %49 : vector<1x8xf32>
    %cst_23 = arith.constant -1.000000e+09 : f32
    %51 = vector.shape_cast %50 : vector<1x8xi1> to vector<1x8xi1>
    %52 = vector.broadcast %51 : vector<1x8xi1> to vector<8x8xi1>
    %53 = vector.broadcast %cst_23 : f32 to vector<8x8xf32>
    %54 = arith.select %52, %53, %48 : vector<8x8xi1>, vector<8x8xf32>
    %cst_24 = arith.constant dense<0xFF800000> : vector<8xf32>
    %55 = vector.multi_reduction <maximumf>, %54, %cst_24 [1] : vector<8x8xf32> to vector<8xf32>
    %56 = vector.shape_cast %55 : vector<8xf32> to vector<8x1xf32>
    %57 = vector.broadcast %56 : vector<8x1xf32> to vector<8x8xf32>
    %58 = arith.subf %54, %57 : vector<8x8xf32>
    %59 = math.exp %58 : vector<8x8xf32>
    %cst_25 = arith.constant dense<0.000000e+00> : vector<8xf32>
    %60 = vector.multi_reduction <add>, %59, %cst_25 [1] : vector<8x8xf32> to vector<8xf32>
    %61 = vector.shape_cast %60 : vector<8xf32> to vector<8x1xf32>
    %62 = tpu.reciprocal %61 {approx = true} : vector<8x1xf32> -> vector<8x1xf32>
    %63 = vector.broadcast %62 : vector<8x1xf32> to vector<8x8xf32>
    %64 = arith.mulf %59, %63 : vector<8x8xf32>
    %65 = arith.truncf %64 : vector<8x8xf32> to vector<8x8xbf16>
    %cst_26 = arith.constant dense<0.000000e+00> : vector<8x8xf32>
    %66 = tpu.matmul %65, %47, %cst_26 {dimension_numbers = #tpu.dot_dimension_numbers<[1], [0], [0], [1], [0, 0, 1, 1], [], []>} : vector<8x8xbf16>, vector<8x8xbf16>, vector<8x8xf32> -> vector<8x8xf32>
    %67 = arith.truncf %66 : vector<8x8xf32> to vector<8x8xbf16>
    %c1 = arith.constant 1 : index
    %c0_27 = arith.constant 0 : index
    %c0_28 = arith.constant 0 : index
    %68 = vector.load %arg4[%c1, %c0_27, %c0_28] : memref<4x8x32xbf16, #tpu.memory_space<vmem>>, vector<1x8x32xbf16>
    %69 = vector.shape_cast %68 : vector<1x8x32xbf16> to vector<8x32xbf16>
    %cst_29 = arith.constant dense<0.000000e+00> : vector<8x32xf32>
    %70 = tpu.matmul %67, %69, %cst_29 {dimension_numbers = #tpu.dot_dimension_numbers<[1], [0], [0], [1], [0, 0, 1, 1], [], []>} : vector<8x8xbf16>, vector<8x32xbf16>, vector<8x32xf32> -> vector<8x32xf32>
    %71 = arith.addf %44, %70 : vector<8x32xf32>
    %72 = vector.extract_strided_slice %16 {offsets = [0, 16], sizes = [8, 8], strides = [1, 1]} : vector<8x96xbf16> to vector<8x8xbf16>
    %73 = vector.extract_strided_slice %16 {offsets = [0, 48], sizes = [8, 8], strides = [1, 1]} : vector<8x96xbf16> to vector<8x8xbf16>
    %74 = vector.extract_strided_slice %16 {offsets = [0, 80], sizes = [8, 8], strides = [1, 1]} : vector<8x96xbf16> to vector<8x8xbf16>
    %cst_30 = arith.constant dense<0.000000e+00> : vector<8x8xf32>
    %75 = tpu.matmul %72, %73, %cst_30 {dimension_numbers = #tpu.dot_dimension_numbers<[1], [1], [0], [0], [0, 0, 1, 0], [], []>} : vector<8x8xbf16>, vector<8x8xbf16>, vector<8x8xf32> -> vector<8x8xf32>
    %cst_31 = arith.constant 5.000000e-01 : f32
    %76 = vector.broadcast %cst_31 : f32 to vector<1x8xf32>
    %77 = arith.cmpf ogt, %9, %76 : vector<1x8xf32>
    %cst_32 = arith.constant -1.000000e+09 : f32
    %78 = vector.shape_cast %77 : vector<1x8xi1> to vector<1x8xi1>
    %79 = vector.broadcast %78 : vector<1x8xi1> to vector<8x8xi1>
    %80 = vector.broadcast %cst_32 : f32 to vector<8x8xf32>
    %81 = arith.select %79, %80, %75 : vector<8x8xi1>, vector<8x8xf32>
    %cst_33 = arith.constant dense<0xFF800000> : vector<8xf32>
    %82 = vector.multi_reduction <maximumf>, %81, %cst_33 [1] : vector<8x8xf32> to vector<8xf32>
    %83 = vector.shape_cast %82 : vector<8xf32> to vector<8x1xf32>
    %84 = vector.broadcast %83 : vector<8x1xf32> to vector<8x8xf32>
    %85 = arith.subf %81, %84 : vector<8x8xf32>
    %86 = math.exp %85 : vector<8x8xf32>
    %cst_34 = arith.constant dense<0.000000e+00> : vector<8xf32>
    %87 = vector.multi_reduction <add>, %86, %cst_34 [1] : vector<8x8xf32> to vector<8xf32>
    %88 = vector.shape_cast %87 : vector<8xf32> to vector<8x1xf32>
    %89 = tpu.reciprocal %88 {approx = true} : vector<8x1xf32> -> vector<8x1xf32>
    %90 = vector.broadcast %89 : vector<8x1xf32> to vector<8x8xf32>
    %91 = arith.mulf %86, %90 : vector<8x8xf32>
    %92 = arith.truncf %91 : vector<8x8xf32> to vector<8x8xbf16>
    %cst_35 = arith.constant dense<0.000000e+00> : vector<8x8xf32>
    %93 = tpu.matmul %92, %74, %cst_35 {dimension_numbers = #tpu.dot_dimension_numbers<[1], [0], [0], [1], [0, 0, 1, 1], [], []>} : vector<8x8xbf16>, vector<8x8xbf16>, vector<8x8xf32> -> vector<8x8xf32>
    %94 = arith.truncf %93 : vector<8x8xf32> to vector<8x8xbf16>
    %c2 = arith.constant 2 : index
    %c0_36 = arith.constant 0 : index
    %c0_37 = arith.constant 0 : index
    %95 = vector.load %arg4[%c2, %c0_36, %c0_37] : memref<4x8x32xbf16, #tpu.memory_space<vmem>>, vector<1x8x32xbf16>
    %96 = vector.shape_cast %95 : vector<1x8x32xbf16> to vector<8x32xbf16>
    %cst_38 = arith.constant dense<0.000000e+00> : vector<8x32xf32>
    %97 = tpu.matmul %94, %96, %cst_38 {dimension_numbers = #tpu.dot_dimension_numbers<[1], [0], [0], [1], [0, 0, 1, 1], [], []>} : vector<8x8xbf16>, vector<8x32xbf16>, vector<8x32xf32> -> vector<8x32xf32>
    %98 = arith.addf %71, %97 : vector<8x32xf32>
    %99 = vector.extract_strided_slice %16 {offsets = [0, 24], sizes = [8, 8], strides = [1, 1]} : vector<8x96xbf16> to vector<8x8xbf16>
    %100 = vector.extract_strided_slice %16 {offsets = [0, 56], sizes = [8, 8], strides = [1, 1]} : vector<8x96xbf16> to vector<8x8xbf16>
    %101 = vector.extract_strided_slice %16 {offsets = [0, 88], sizes = [8, 8], strides = [1, 1]} : vector<8x96xbf16> to vector<8x8xbf16>
    %cst_39 = arith.constant dense<0.000000e+00> : vector<8x8xf32>
    %102 = tpu.matmul %99, %100, %cst_39 {dimension_numbers = #tpu.dot_dimension_numbers<[1], [1], [0], [0], [0, 0, 1, 0], [], []>} : vector<8x8xbf16>, vector<8x8xbf16>, vector<8x8xf32> -> vector<8x8xf32>
    %cst_40 = arith.constant 5.000000e-01 : f32
    %103 = vector.broadcast %cst_40 : f32 to vector<1x8xf32>
    %104 = arith.cmpf ogt, %9, %103 : vector<1x8xf32>
    %cst_41 = arith.constant -1.000000e+09 : f32
    %105 = vector.shape_cast %104 : vector<1x8xi1> to vector<1x8xi1>
    %106 = vector.broadcast %105 : vector<1x8xi1> to vector<8x8xi1>
    %107 = vector.broadcast %cst_41 : f32 to vector<8x8xf32>
    %108 = arith.select %106, %107, %102 : vector<8x8xi1>, vector<8x8xf32>
    %cst_42 = arith.constant dense<0xFF800000> : vector<8xf32>
    %109 = vector.multi_reduction <maximumf>, %108, %cst_42 [1] : vector<8x8xf32> to vector<8xf32>
    %110 = vector.shape_cast %109 : vector<8xf32> to vector<8x1xf32>
    %111 = vector.broadcast %110 : vector<8x1xf32> to vector<8x8xf32>
    %112 = arith.subf %108, %111 : vector<8x8xf32>
    %113 = math.exp %112 : vector<8x8xf32>
    %cst_43 = arith.constant dense<0.000000e+00> : vector<8xf32>
    %114 = vector.multi_reduction <add>, %113, %cst_43 [1] : vector<8x8xf32> to vector<8xf32>
    %115 = vector.shape_cast %114 : vector<8xf32> to vector<8x1xf32>
    %116 = tpu.reciprocal %115 {approx = true} : vector<8x1xf32> -> vector<8x1xf32>
    %117 = vector.broadcast %116 : vector<8x1xf32> to vector<8x8xf32>
    %118 = arith.mulf %113, %117 : vector<8x8xf32>
    %119 = arith.truncf %118 : vector<8x8xf32> to vector<8x8xbf16>
    %cst_44 = arith.constant dense<0.000000e+00> : vector<8x8xf32>
    %120 = tpu.matmul %119, %101, %cst_44 {dimension_numbers = #tpu.dot_dimension_numbers<[1], [0], [0], [1], [0, 0, 1, 1], [], []>} : vector<8x8xbf16>, vector<8x8xbf16>, vector<8x8xf32> -> vector<8x8xf32>
    %121 = arith.truncf %120 : vector<8x8xf32> to vector<8x8xbf16>
    %c3 = arith.constant 3 : index
    %c0_45 = arith.constant 0 : index
    %c0_46 = arith.constant 0 : index
    %122 = vector.load %arg4[%c3, %c0_45, %c0_46] : memref<4x8x32xbf16, #tpu.memory_space<vmem>>, vector<1x8x32xbf16>
    %123 = vector.shape_cast %122 : vector<1x8x32xbf16> to vector<8x32xbf16>
    %cst_47 = arith.constant dense<0.000000e+00> : vector<8x32xf32>
    %124 = tpu.matmul %121, %123, %cst_47 {dimension_numbers = #tpu.dot_dimension_numbers<[1], [0], [0], [1], [0, 0, 1, 1], [], []>} : vector<8x8xbf16>, vector<8x32xbf16>, vector<8x32xf32> -> vector<8x32xf32>
    %125 = arith.addf %98, %124 : vector<8x32xf32>
    %c0_48 = arith.constant 0 : index
    %c0_49 = arith.constant 0 : index
    %126 = vector.load %arg5[%c0_48, %c0_49] : memref<1x32xf32, #tpu.memory_space<vmem>>, vector<1x32xf32>
    %127 = vector.broadcast %126 : vector<1x32xf32> to vector<8x32xf32>
    %128 = arith.addf %125, %127 : vector<8x32xf32>
    %129 = arith.addf %1, %128 : vector<8x32xf32>
    %c0_50 = arith.constant 0 : index
    %c0_51 = arith.constant 0 : index
    %130 = vector.load %arg6[%c0_50, %c0_51] : memref<1x32xf32, #tpu.memory_space<vmem>>, vector<1x32xf32>
    %c0_52 = arith.constant 0 : index
    %c0_53 = arith.constant 0 : index
    %131 = vector.load %arg7[%c0_52, %c0_53] : memref<1x32xf32, #tpu.memory_space<vmem>>, vector<1x32xf32>
    %cst_54 = arith.constant dense<0.000000e+00> : vector<8xf32>
    %132 = vector.multi_reduction <add>, %129, %cst_54 [1] : vector<8x32xf32> to vector<8xf32>
    %133 = vector.shape_cast %132 : vector<8xf32> to vector<8x1xf32>
    %cst_55 = arith.constant 3.200000e+01 : f32
    %134 = vector.broadcast %cst_55 : f32 to vector<8x1xf32>
    %135 = arith.divf %133, %134 : vector<8x1xf32>
    %136 = vector.broadcast %135 : vector<8x1xf32> to vector<8x32xf32>
    %137 = arith.subf %129, %136 : vector<8x32xf32>
    %138 = arith.mulf %137, %137 : vector<8x32xf32>
    %cst_56 = arith.constant dense<0.000000e+00> : vector<8xf32>
    %139 = vector.multi_reduction <add>, %138, %cst_56 [1] : vector<8x32xf32> to vector<8xf32>
    %140 = vector.shape_cast %139 : vector<8xf32> to vector<8x1xf32>
    %cst_57 = arith.constant 3.200000e+01 : f32
    %141 = vector.broadcast %cst_57 : f32 to vector<8x1xf32>
    %142 = arith.divf %140, %141 : vector<8x1xf32>
    %cst_58 = arith.constant 9.99999974E-6 : f32
    %143 = vector.broadcast %cst_58 : f32 to vector<8x1xf32>
    %144 = arith.addf %142, %143 : vector<8x1xf32>
    %145 = math.rsqrt %144 : vector<8x1xf32>
    %146 = vector.broadcast %145 : vector<8x1xf32> to vector<8x32xf32>
    %147 = arith.mulf %137, %146 : vector<8x32xf32>
    %148 = vector.broadcast %130 : vector<1x32xf32> to vector<8x32xf32>
    %149 = arith.mulf %147, %148 : vector<8x32xf32>
    %150 = vector.broadcast %131 : vector<1x32xf32> to vector<8x32xf32>
    %151 = arith.addf %149, %150 : vector<8x32xf32>
    %152 = arith.truncf %151 : vector<8x32xf32> to vector<8x32xbf16>
    %c0_59 = arith.constant 0 : index
    %c0_60 = arith.constant 0 : index
    %153 = vector.load %arg8[%c0_59, %c0_60] : memref<32x64xbf16, #tpu.memory_space<vmem>>, vector<32x64xbf16>
    %cst_61 = arith.constant dense<0.000000e+00> : vector<8x64xf32>
    %154 = tpu.matmul %152, %153, %cst_61 {dimension_numbers = #tpu.dot_dimension_numbers<[1], [0], [0], [1], [0, 0, 1, 1], [], []>} : vector<8x32xbf16>, vector<32x64xbf16>, vector<8x64xf32> -> vector<8x64xf32>
    %c0_62 = arith.constant 0 : index
    %c0_63 = arith.constant 0 : index
    %155 = vector.load %arg9[%c0_62, %c0_63] : memref<1x64xf32, #tpu.memory_space<vmem>>, vector<1x64xf32>
    %156 = vector.broadcast %155 : vector<1x64xf32> to vector<8x64xf32>
    %157 = arith.addf %154, %156 : vector<8x64xf32>
    %cst_64 = arith.constant 0.000000e+00 : f32
    %158 = vector.broadcast %cst_64 : f32 to vector<8x64xf32>
    %159 = arith.maximumf %157, %158 : vector<8x64xf32>
    %160 = arith.truncf %159 : vector<8x64xf32> to vector<8x64xbf16>
    %c0_65 = arith.constant 0 : index
    %c0_66 = arith.constant 0 : index
    %161 = vector.load %arg10[%c0_65, %c0_66] : memref<64x32xbf16, #tpu.memory_space<vmem>>, vector<64x32xbf16>
    %cst_67 = arith.constant dense<0.000000e+00> : vector<8x32xf32>
    %162 = tpu.matmul %160, %161, %cst_67 {dimension_numbers = #tpu.dot_dimension_numbers<[1], [0], [0], [1], [0, 0, 1, 1], [], []>} : vector<8x64xbf16>, vector<64x32xbf16>, vector<8x32xf32> -> vector<8x32xf32>
    %c0_68 = arith.constant 0 : index
    %c0_69 = arith.constant 0 : index
    %163 = vector.load %arg11[%c0_68, %c0_69] : memref<1x32xf32, #tpu.memory_space<vmem>>, vector<1x32xf32>
    %164 = vector.broadcast %163 : vector<1x32xf32> to vector<8x32xf32>
    %165 = arith.addf %162, %164 : vector<8x32xf32>
    %166 = arith.addf %151, %165 : vector<8x32xf32>
    %c0_70 = arith.constant 0 : index
    %c0_71 = arith.constant 0 : index
    %167 = vector.load %arg12[%c0_70, %c0_71] : memref<1x32xf32, #tpu.memory_space<vmem>>, vector<1x32xf32>
    %c0_72 = arith.constant 0 : index
    %c0_73 = arith.constant 0 : index
    %168 = vector.load %arg13[%c0_72, %c0_73] : memref<1x32xf32, #tpu.memory_space<vmem>>, vector<1x32xf32>
    %cst_74 = arith.constant dense<0.000000e+00> : vector<8xf32>
    %169 = vector.multi_reduction <add>, %166, %cst_74 [1] : vector<8x32xf32> to vector<8xf32>
    %170 = vector.shape_cast %169 : vector<8xf32> to vector<8x1xf32>
    %cst_75 = arith.constant 3.200000e+01 : f32
    %171 = vector.broadcast %cst_75 : f32 to vector<8x1xf32>
    %172 = arith.divf %170, %171 : vector<8x1xf32>
    %173 = vector.broadcast %172 : vector<8x1xf32> to vector<8x32xf32>
    %174 = arith.subf %166, %173 : vector<8x32xf32>
    %175 = arith.mulf %174, %174 : vector<8x32xf32>
    %cst_76 = arith.constant dense<0.000000e+00> : vector<8xf32>
    %176 = vector.multi_reduction <add>, %175, %cst_76 [1] : vector<8x32xf32> to vector<8xf32>
    %177 = vector.shape_cast %176 : vector<8xf32> to vector<8x1xf32>
    %cst_77 = arith.constant 3.200000e+01 : f32
    %178 = vector.broadcast %cst_77 : f32 to vector<8x1xf32>
    %179 = arith.divf %177, %178 : vector<8x1xf32>
    %cst_78 = arith.constant 9.99999974E-6 : f32
    %180 = vector.broadcast %cst_78 : f32 to vector<8x1xf32>
    %181 = arith.addf %179, %180 : vector<8x1xf32>
    %182 = math.rsqrt %181 : vector<8x1xf32>
    %183 = vector.broadcast %182 : vector<8x1xf32> to vector<8x32xf32>
    %184 = arith.mulf %174, %183 : vector<8x32xf32>
    %185 = vector.broadcast %167 : vector<1x32xf32> to vector<8x32xf32>
    %186 = arith.mulf %184, %185 : vector<8x32xf32>
    %187 = vector.broadcast %168 : vector<1x32xf32> to vector<8x32xf32>
    %188 = arith.addf %186, %187 : vector<8x32xf32>
    %c0_79 = arith.constant 0 : index
    %c0_80 = arith.constant 0 : index
    %c0_81 = arith.constant 0 : index
    %189 = vector.load %arg14[%c0_79, %c0_80, %c0_81] : memref<1x8x32xf32, #tpu.memory_space<vmem>>, vector<1x8x32xf32>
    %190 = vector.shape_cast %189 : vector<1x8x32xf32> to vector<8x32xf32>
    %191 = vector.shape_cast %188 : vector<8x32xf32> to vector<1x8x32xf32>
    tpu.vector_store %arg14[%c0_79, %c0_80, %c0_81], %191 {strides = array<i32>} : memref<1x8x32xf32, #tpu.memory_space<vmem>>, vector<1x8x32xf32>,
    return
  }
  func.func @transform_0(%arg0: i32) -> (i32, i32, i32) {
    %c0_i32 = arith.constant 0 : i32
    %c0_i32_0 = arith.constant 0 : i32
    %c0_i32_1 = arith.constant 0 : i32
    return %arg0, %c0_i32, %c0_i32_0 : i32, i32, i32
  }
  func.func @transform_1(%arg0: i32) -> (i32, i32) {
    %c0_i32 = arith.constant 0 : i32
    %c0_i32_0 = arith.constant 0 : i32
    %c0_i32_1 = arith.constant 0 : i32
    return %c0_i32, %c0_i32_0 : i32, i32
  }
  func.func @transform_2(%arg0: i32) -> (i32, i32) {
    %c0_i32 = arith.constant 0 : i32
    %c0_i32_0 = arith.constant 0 : i32
    %c0_i32_1 = arith.constant 0 : i32
    return %c0_i32, %c0_i32_0 : i32, i32
  }
  func.func @transform_3(%arg0: i32) -> (i32, i32, i32) {
    %c0_i32 = arith.constant 0 : i32
    %c0_i32_0 = arith.constant 0 : i32
    %c0_i32_1 = arith.constant 0 : i32
    %c0_i32_2 = arith.constant 0 : i32
    return %c0_i32, %c0_i32_0, %c0_i32_1 : i32, i32, i32
  }
  func.func @transform_4(%arg0: i32) -> (i32, i32) {
    %c0_i32 = arith.constant 0 : i32
    %c0_i32_0 = arith.constant 0 : i32
    %c0_i32_1 = arith.constant 0 : i32
    return %c0_i32, %c0_i32_0 : i32, i32
  }
  func.func @transform_5(%arg0: i32) -> (i32, i32) {
    %c0_i32 = arith.constant 0 : i32
    %c0_i32_0 = arith.constant 0 : i32
    %c0_i32_1 = arith.constant 0 : i32
    return %c0_i32, %c0_i32_0 : i32, i32
  }
  func.func @transform_6(%arg0: i32) -> (i32, i32) {
    %c0_i32 = arith.constant 0 : i32
    %c0_i32_0 = arith.constant 0 : i32
    %c0_i32_1 = arith.constant 0 : i32
    return %c0_i32, %c0_i32_0 : i32, i32
  }
  func.func @transform_7(%arg0: i32) -> (i32, i32) {
    %c0_i32 = arith.constant 0 : i32
    %c0_i32_0 = arith.constant 0 : i32
    %c0_i32_1 = arith.constant 0 : i32
    return %c0_i32, %c0_i32_0 : i32, i32
  }
  func.func @transform_8(%arg0: i32) -> (i32, i32) {
    %c0_i32 = arith.constant 0 : i32
    %c0_i32_0 = arith.constant 0 : i32
    %c0_i32_1 = arith.constant 0 : i32
    return %c0_i32, %c0_i32_0 : i32, i32
  }
  func.func @transform_9(%arg0: i32) -> (i32, i32) {
    %c0_i32 = arith.constant 0 : i32
    %c0_i32_0 = arith.constant 0 : i32
    %c0_i32_1 = arith.constant 0 : i32
    return %c0_i32, %c0_i32_0 : i32, i32
  }
  func.func @transform_10(%arg0: i32) -> (i32, i32) {
    %c0_i32 = arith.constant 0 : i32
    %c0_i32_0 = arith.constant 0 : i32
    %c0_i32_1 = arith.constant 0 : i32
    return %c0_i32, %c0_i32_0 : i32, i32
  }
  func.func @transform_11(%arg0: i32) -> (i32, i32) {
    %c0_i32 = arith.constant 0 : i32
    %c0_i32_0 = arith.constant 0 : i32
    %c0_i32_1 = arith.constant 0 : i32
    return %c0_i32, %c0_i32_0 : i32, i32
  }
  func.func @transform_12(%arg0: i32) -> (i32, i32) {
    %c0_i32 = arith.constant 0 : i32
    %c0_i32_0 = arith.constant 0 : i32
    %c0_i32_1 = arith.constant 0 : i32
    return %c0_i32, %c0_i32_0 : i32, i32
  }
  func.func @transform_13(%arg0: i32) -> (i32, i32, i32) {
    %c0_i32 = arith.constant 0 : i32
    %c0_i32_0 = arith.constant 0 : i32
    %c0_i32_1 = arith.constant 0 : i32
    return %arg0, %c0_i32, %c0_i32_0 : i32, i32, i32
  }
}

</mosaic_0001>

<bundles_post_ra>
// kernel: tpu_custom_call.1
= control target key start
LH: loop header
LB: loop body
LE: loop exit
PB: predicated region body
PF: predicated region fallthrough
CT: control target
= control target key end

     0   :  { %s2626_s0 = inlined_call_operand.vmem [shape: f32[2,8,32], index: 0, kind: input, shape index: {}]   ;;  %s2627_s1 = inlined_call_operand.vmem [shape: bf16[32,96], index: 1, kind: input, shape index: {}]   ;;  %s2628_s2 = inlined_call_operand.hbm [shape: f32[1,96], index: 2, kind: input, shape index: {}]   ;;  %s2629_s3 = inlined_call_operand.vmem [shape: bf16[4,8,32], index: 3, kind: input, shape index: {}]   ;;  %s2630_s4 = inlined_call_operand.hbm [shape: f32[1,32], index: 4, kind: input, shape index: {}]   ;;  %s2631_s5 = inlined_call_operand.hbm [shape: f32[1,32], index: 5, kind: input, shape index: {}]   ;;  %s2632_s6 = inlined_call_operand.hbm [shape: f32[1,32], index: 6, kind: input, shape index: {}]   ;;  %s2633_s7 = inlined_call_operand.hbm [shape: bf16[32,64], index: 7, kind: input, shape index: {}]   ;;  %s2634_s8 = inlined_call_operand.hbm [shape: f32[1,64], index: 8, kind: input, shape index: {}]   ;;  %s2635_s9 = inlined_call_operand.vmem [shape: bf16[64,32], index: 9, kind: input, shape index: {}]   ;;  %s2636_s10 = inlined_call_operand.vmem [shape: f32[1,32], index: 10, kind: input, shape index: {}]   ;;  %s2637_s11 = inlined_call_operand.vmem [shape: f32[1,32], index: 11, kind: input, shape index: {}]   ;;  %s2638_s12 = inlined_call_operand.vmem [shape: f32[1,32], index: 12, kind: input, shape index: {}]   ;;  %s2639_s13 = inlined_call_operand.hbm [shape: f32[2,8,32], index: 13, kind: output, shape index: {}]  }
   0x1   :  { %2647 = sst [smem:[#allocation23_spill]] %s2628_s2 }
   0x2   :  { %2648 = sst [smem:[#allocation24_spill]] %s2630_s4 }
   0x3   :  { %18 = vsyncpa [#allocation3], 0 }
   0x4   :  { %19 = vsyncpa [#allocation6], 0 }
   0x5   :  { %20 = vsyncpa [#allocation9], 0 }
   0x6   :  { %21 = vsyncpa [#allocation12], 0 }
   0x7   :  { %22 = vsyncpa [#allocation4], 0 }
   0x8   :  { %24 = vsyncpa [#allocation4 + $0x1], 0  ;;  %s2288_s25 = smov 0   ;;  %s2290_s26 = smov 0  }
   0x9   :  { %s2292_s27 = smov 0   ;;  %s2294_s28 = smov 0  }
   0xa LB: > { %2649 = sst [smem:[#allocation19_spill]] %s2189_s27  ;;  %s2309_s29 = sadd.s32 4294967295, %s2193_s28   ;;  %s2193_s28 = sphi %s2294_s28, %s2672_s28   ;;  %s2189_s27 = sphi %s2292_s27, %s2674_s27   ;;  %s2185_s26 = sphi %s2290_s26, %s2676_s26   ;;  %s2181_s25 = sphi %s2288_s25, %s2675_s25  }
   0xb   : > { %s1626_s30 = sadd.s32 4294967294, %s2193_s28   ;;  %s2313_s14 = sadd.s32 1, %s2193_s28  }
   0xc   : > { %2650 = sst [smem:[#allocation20_spill]] %s2313_s14  ;;  %s315_s15 = sadd.s32 1, %s2189_s27 }
   0xd   : > { %s312_s16 = ssub.s32 %s2193_s28, %s2313_s14  ;;  %p325_p0 = scmp.ne.s32.totalorder %s2189_s27, %s2185_s26 }
   0xe   : > { %p313_p1 = scmp.eq.s32.totalorder %s312_s16, 0  ;;  %p326_p2 = scmp.eq.s32.totalorder %s2309_s29, 1 }
   0xf   : > { %p331_p3 = scmp.ne.s32.totalorder %s2185_s26, %s2181_s25  ;;  %p332_p4 = scmp.eq.s32.totalorder %s1626_s30, 1 }
  0x10   : > { %s2324_s17 = scalar_select %p313_p1, %s2189_s27, %s315_s15  }
  0x11   : > { %p2326_p5 = por %p326_p2, %p325_p0  ;;  %p2330_p6 = por %p332_p4, %p331_p3 }
  0x12   : > { %2651 = sst [smem:[#allocation21_spill]] %s2324_s17  ;;  %p1627_p7 = scmp.ge.s32.totalorder %s2193_s28, 1 }
  0x13   : > { %s2652_s18 = scalar_select %p2326_p5, 1, 0 }
  0x14   : > { %s2653_s19 = scalar_select %p2330_p6, 1, 0 }
  0x15   : > { %p339_p8 = scmp.lt.s32.totalorder %s2193_s28, 3  ;;  %p2643_p9 = scmp.eq.s32.totalorder %s2309_s29, 0 }
  0x16   : > { %2654 = sst [smem:[#allocation22_spill]] %s2653_s19  ;;  %s2195_s21 = smov [#allocation5]  }
  0x17   : > { %p2337_p10 = pnand %p1627_p7, %p339_p8  ;;  %s369_s22 = sshll.u32 %s2195_s21, 4  ;;  %s370_s22 = int_to_ptr.vmem [resolvable:$true] %s369_s22 }
  0x18   : > { %s2196_s23 = smov [#allocation8]   ;;  %s2197_s15 = smov [#allocation2]  }
  0x19   : > { %s2655_s20 = scalar_select %p2337_p10, 1, 0 }
  0x1a   : > { %p1843_p11 = pneg %p2337_p10  ;;  %s391_s24 = sshll.u32 %s2196_s23, 4  ;;  %s392_s24 = int_to_ptr.vmem [resolvable:$true] %s391_s24 }
  0x1b   : > { %s355_s16 = sshll.u32 %s2197_s15, 4  ;;  %s1972_s21 = scalar_lea.vmem %s370_s22, 16  ;;  %s2349_s16 = int_to_ptr.vmem [resolvable:$true] %s355_s16 }
  0x1c   : > { %p2345_p12 = pnand %p2643_p9, %p1843_p11  ;;  %p1973_p0 = scmp.ne.s32.totalorder %s370_s22, %s1972_s21 }
  0x1d   : > { %s1979_s23 = scalar_lea.vmem %s370_s22, 32  ;;  %p1980_p3 = scmp.lt.s32.totalorder %s370_s22, %s370_s22 }
  0x1e   : > { %p2353_p13 = pneg %p2345_p12  ;;  %p1981_p4 = scmp.lt.s32.totalorder %s1979_s23, %s1972_s21 }
  0x20   : > { %p1975_p1 = pnand %p1973_p0, %p2353_p13  ;;  %p1982_p7 = por %p1981_p4, %p1980_p3 }
  0x22   : > { %p1976_p2 = pneg %p1975_p1 }
  0x24   : > { %p1983_p8 = pnand %p1982_p7, %p1976_p2 }
  0x26   : > { %1986 = shalt.err (!%p1983_p8)
}
  0x27   : > { %s2658_s4 = sld [smem:[#allocation24_spill]]  ;;  %s1998_s14 = scalar_lea.vmem %s392_s24, 16 }
  0x28   : > { %p1999_p11 = scmp.ne.s32.totalorder %s392_s24, %s1998_s14  ;;  %s2005_s19 = scalar_lea.vmem %s392_s24, 32 }
  0x29   : > { %p2006_p0 = scmp.lt.s32.totalorder %s392_s24, %s392_s24  ;;  %p2007_p1 = scmp.lt.s32.totalorder %s2005_s19, %s1998_s14 }
  0x2a   : > { %p2001_p9 = pnand %p1999_p11, %p2353_p13 }
  0x2b   : > { %p2008_p5 = por %p2007_p1, %p2006_p0 }
  0x2c   : > { %p2002_p6 = pneg %p2001_p9 }
  0x2d   : > { %1849 = dma.hbm_to_vmem [thread:$0]  (!%p2345_p12), %s2658_s4, 16, %s370_s22, [#allocation6]  }
  0x2e   : > { %p2009_p10 = pnand %p2008_p5, %p2002_p6 }
  0x30   : > { %2012 = shalt.err (!%p2009_p10)
}
  0x31   : > { %1855 = dma.hbm_to_vmem [thread:$0]  (!%p2345_p12), %s2632_s6, 16, %s392_s24, [#allocation9]  }
  0x32   : > { %s2024_s27 = scalar_lea.vmem %s2349_s16, 16  ;;  %s2031_s14 = scalar_lea.vmem %s2349_s16, 32 }
  0x33   : > { %p2025_p2 = scmp.ne.s32.totalorder %s2349_s16, %s2024_s27  ;;  %p2032_p5 = scmp.lt.s32.totalorder %s2349_s16, %s2349_s16 }
  0x34   : > { %p2033_p6 = scmp.lt.s32.totalorder %s2031_s14, %s2024_s27 }
  0x35   : > { %p2027_p9 = pnand %p2025_p2, %p2353_p13 }
  0x36   : > { %p2034_p10 = por %p2033_p6, %p2032_p5 }
  0x37   : > { %p2028_p3 = pneg %p2027_p9 }
  0x39   : > { %p2035_p4 = pnand %p2034_p10, %p2028_p3 }
  0x3b   : > { %2038 = shalt.err (!%p2035_p4)
}
  0x3c   : > { %s2659_s2 = sld [smem:[#allocation23_spill]]  ;;  %s2198_s24 = smov [#allocation7]  }
  0x3d   : > { %s380_s15 = sshll.u32 %s2198_s24, 4  ;;  %s2199_s21 = smov [#allocation10]   ;;  %s381_s15 = int_to_ptr.vmem [resolvable:$true] %s380_s15 }
  0x3e   : > { %s401_s23 = sshll.u32 %s2199_s21, 4  ;;  %s2050_s4 = scalar_lea.vmem %s381_s15, 16  ;;  %s402_s23 = int_to_ptr.vmem [resolvable:$true] %s401_s23 }
  0x3f   : > { %p2051_p7 = scmp.ne.s32.totalorder %s381_s15, %s2050_s4  ;;  %s2057_s27 = scalar_lea.vmem %s381_s15, 32 }
  0x40   : > { %p2058_p0 = scmp.lt.s32.totalorder %s381_s15, %s381_s15  ;;  %p2059_p1 = scmp.lt.s32.totalorder %s2057_s27, %s2050_s4 }
  0x41   : > { %p2053_p8 = pnand %p2051_p7, %p2353_p13 }
  0x42   : > { %1846 = dma.hbm_to_vmem [thread:$0]  (!%p2345_p12), %s2659_s2, 16, %s2349_s16, [#allocation3]  }
  0x43   : > { %p2054_p11 = pneg %p2053_p8  ;;  %p2060_p2 = por %p2059_p1, %p2058_p0 }
  0x45   : > { %p2061_p9 = pnand %p2060_p2, %p2054_p11 }
  0x47   : > { %2064 = shalt.err (!%p2061_p9)
}
  0x48   : > { %1852 = dma.hbm_to_vmem [thread:$0]  (!%p2345_p12), %s2631_s5, 16, %s381_s15, [#allocation6]  }
  0x49   : > { %s2076_s19 = scalar_lea.vmem %s402_s23, 256  ;;  %p2084_p10 = scmp.lt.s32.totalorder %s402_s23, %s402_s23 }
  0x4a   : > { %p2077_p3 = scmp.ne.s32.totalorder %s402_s23, %s2076_s19  ;;  %p2085_p4 = scmp.lt.s32.totalorder %s2076_s19, %s2076_s19 }
  0x4c   : > { %p2079_p5 = pnand %p2077_p3, %p2353_p13  ;;  %p2086_p7 = por %p2085_p4, %p2084_p10 }
  0x4e   : > { %p2080_p6 = pneg %p2079_p5 }
  0x50   : > { %p2087_p8 = pnand %p2086_p7, %p2080_p6 }
  0x52   : > { %2090 = shalt.err (!%p2087_p8)
}
  0x53   : > { %s2200_s4 = smov 64   ;;  %s2201_s22 = smov 4  }
  0x54   : > { %1858 = dma.hbm_to_vmem [thread:$0]  (!%p2345_p12), %s2633_s7, 256, %s402_s23, [#allocation9], %s2200_s4, %s2200_s4, %s2201_s22  }
  0x55   : > { %s2202_s15 = smov [#allocation11]  }
  0x56   : > { %s415_s27 = sshll.u32 %s2202_s15, 4  ;;  %s416_s27 = int_to_ptr.vmem [resolvable:$true] %s415_s27 }
  0x57   : > { %s2102_s14 = scalar_lea.vmem %s416_s27, 16  ;;  %s2109_s16 = scalar_lea.vmem %s416_s27, 32 }
  0x58   : > { %p2103_p11 = scmp.ne.s32.totalorder %s416_s27, %s2102_s14  ;;  %p2110_p2 = scmp.lt.s32.totalorder %s416_s27, %s416_s27 }
  0x59   : > { %p2111_p9 = scmp.lt.s32.totalorder %s2109_s16, %s2102_s14 }
  0x5a   : > { %p2105_p0 = pnand %p2103_p11, %p2353_p13 }
  0x5b   : > { %p2112_p3 = por %p2111_p9, %p2110_p2 }
  0x5c   : > { %p2106_p1 = pneg %p2105_p0 }
  0x5e   : > { %p2113_p5 = pnand %p2112_p3, %p2106_p1 }
  0x60   : > { %2116 = shalt.err (!%p2113_p5)
}
  0x61   : > { %1861 = dma.hbm_to_vmem [thread:$0]  (!%p2345_p12), %s2634_s8, 16, %s416_s27, [#allocation12]  }
  0x62   : > { %p2660_p6 = scmp.ne.s32.totalorder %s2655_s20, 0 }
  0x63   : > { %p2661_p10 = scmp.eq.s32.totalorder (!%p2660_p6), %s2309_s29, 0 }
  0x64   : > { %447 = sbr.rel (%p2660_p6) target bundleno = 3609 (0xe19), region = 72 }
  0x69   : > { %2160 = dma.done.wait (%p2661_p10), [#allocation3], 16   ;;  %p2662_p13 = pmov %p2661_p10 }
  0x6a   : > { %p2663_p4 = pmov %p2661_p10 }
  0x6b   : > { %2162 = vsyncadd (%p2662_p13), [#allocation3], 4294967280 }
  0x6c   : > { %2164 = dma.done.wait (%p2663_p4), [#allocation6], 32   ;;  %p2664_p7 = pmov %p2663_p4 }
  0x6d   : > { %p2665_p8 = pmov %p2663_p4 }
  0x6e   : > { %2166 = vsyncadd (%p2664_p7), [#allocation6], 4294967264 }
  0x6f   : > { %2168 = dma.done.wait (%p2665_p8), [#allocation9], 272   ;;  %p2666_p12 = pmov %p2663_p4 }
  0x70   : > { %p2667_p11 = pmov %p2663_p4 }
  0x71   : > { %2170 = vsyncadd (%p2666_p12), [#allocation9], 4294967024 }
  0x72   : > { %2172 = dma.done.wait (%p2667_p11), [#allocation12], 16   ;;  %p2668_p0 = pmov %p2663_p4 }
  0x73   : > { %p510_p1 = scmp.lt.s32.totalorder %s2309_s29, 1  ;;  %v2203_v0 = vmov 0.0   ;;  %vm2204_vm0 = vmmov 0   ;;  %v1933_v1 = vld [vmem:[%s2627_s1 + $0x8] sm:$0xff]   ;;  %v1934_v2 = vld [vmem:[%s2627_s1] sm:$0xff]   ;;  %vm518_vm1 = vcmask 261120   ;;  %v674_v20 = vlaneseq }
  0x74   : > { %2174 = vsyncadd (%p2668_p0), [#allocation12], 4294967280  ;;  %1717 = vmatprep.subr.bf16.mxu1 %v2203_v0  ;;  %1721 = vmatprep.mubr.msk.bf16.mxu1 %vm2204_vm0, %v2203_v0  ;;  %v1644_v5 = vld [vmem:[#allocation2] ss:$0 sm:$0xff]  ;;  %s2205_s15 = smov 120   ;;  %s2206_s27 = smov 96  }
  0x75   : > { %s511_s2 = scalar_select %p510_p1, %s2309_s29, 1  ;;  %1731 = vmatprep.subr.bf16.mxu0 %v2203_v0  ;;  %1733 = vmatprep.mubr.msk.bf16.mxu0 %vm2204_vm0, %v2203_v0  ;;  %vm625_vm3 = vcmask 64512   ;;  %v675_v22 = vshrl.u32 %v674_v20, 7  ;;  %v2208_v24 = vmov 0   ;;  %vm697_vm6 = vcmask 1043456  }
  0x76   : > { %1718 = vmatpush3.bf16.msra.mxu1 %v1933_v1  ;;  %s2207_s14 = smov 88   ;;  %s2209_s16 = smov 48   ;;  %v742_v59 = vld [vmem:[%s2629_s3] sm:$0xf]  ;;  %v1652_v63 = vld [vmem:[%s2629_s3 + $0x4] sm:$0xf] }
  0x77   : > { %s1643_s17 = sshll.u32 %s511_s2, 3  ;;  %1719 = vmatprep.subr.bf16.mxu1 %v2203_v0  ;;  %v676_v23 = vsub.s32 0, %v675_v22  ;;  %s2210_s19 = smov 64   ;;  %v907_v62 = vsel %vm697_vm6, %v742_v59, 0  ;;  %v861_v1 = vsel %vm697_vm6, %v1652_v63, 0  ;;  %vm1418_vm7 = vcmask 523264  }
  0x78   : > { %s513_s23 = scalar_lea.vmem %s2626_s0, %s1643_s17  ;;  %s2211_s2 = smov 56  }
  0x79   : > { %v2440_v3 = vld [vmem:[%s513_s23] sm:$0xff]  ;;  %s2212_s17 = smov 80   ;;  %s2213_s20 = smov 112  }
  0x7a   : > { %v554_v4 = vpack.c.bf16 %v2440_v3, %v2440_v3  ;;  %1720 = vmatpush3.bf16.msra.mxu1 %v1934_v2  ;;  %vm516_vm2 = vcmp.eq.f32.partialorder %v2440_v3, 0.0  ;;  %s2214_s24 = smov 72   ;;  %s2215_s21 = smov 104  }
  0x7b   : > { %1725 = vmatprep.subr.bf16.mxu1 %v2203_v0  ;;  %v517_v12 = vsel %vm516_vm2, 1.0, %v2203_v0  ;;  %p2669_p9 = scmp.ne.s32.totalorder %s2652_s18, 0 }
  0x7c   : > { %v519_v13 = vsel %vm518_vm1, %v517_v12, -inf }
  0x7d   : > { %1722 = vmatmul.mubr.msk.bf16.vlgmr.msra.gmra.mxu1 %vm518_vm1, %v554_v4 }
  0x7e   : > { %1727 = vmatprep.mubr.msk.bf16.mxu1 %vm2204_vm0, %v2203_v0 }
 0x13d   : > { %v615_v6 = vpop.f32.mrf.mxu1 }
 0x13e   : > { %v616_v7 = vadd.f32 %v1644_v5, %v615_v6 }
 0x13f   : > { %v1723_v8 = vpop.f32.mrf.mxu1 }
 0x140   : > { %v2449_v9 = vpack.c.bf16 %v616_v7, %v616_v7 }
 0x141   : > { %v618_v10 = vpop.f32.mrf.mxu1 }
 0x142   : > { %743 = vrot.lane.b32.xlu1 %v2449_v9, %s2205_s15  ;;  %623 = vrot.lane.b32.xlu0 %v2449_v9, %s2206_s27  ;;  %s507_s27 = sand.u32 1, %s2185_s26  }
 0x143   : > { %v1724_v11 = vpop.f32.mrf.mxu1 }
 0x146   : > { %745 = vrot.lane.b32.xlu0 %v2449_v9, %s2207_s14  ;;  %s2216_s14 = smov 40  }
 0x166   : > { %520 = vmax.xlane.f32.xlu1 %v519_v13 }
 0x1b4   : > { %v624_v14 = vpop.permute.xlu0 %623  ;;  %v744_v18 = vpop.permute.xlu1 %743 }
 0x1b5   : > { %v630_v15 = vsel %vm625_vm3, %v624_v14, 0 }
 0x1b6   : > { %1726 = vmatpush3.bf16.xpose.msra.mxu1 %v630_v15 }
 0x1b7   : > { %1737 = vmatprep.subr.bf16.mxu1 %v2203_v0 }
 0x1b8   : > { %v746_v16 = vpop.permute.xlu0 %745 }
 0x1b9   : > { %v751_v17 = vsel %vm625_vm3, %v746_v16, 0 }
 0x1bd   : > { %1728 = vmatmul.mubr.msk.bf16.vlgmr.msra.gmra.mxu1 %vm625_vm3, %v2449_v9 }
 0x1be   : > { %1738 = vmatpush3.bf16.xpose.msra.mxu1 %v751_v17  ;;  %1739 = vmatprep.mubr.msk.bf16.mxu1 %vm2204_vm0, %v2203_v0 }
 0x1bf   : > { %1749 = vmatprep.subr.bf16.mxu1 %v2203_v0 }
 0x1c5   : > { %1740 = vmatmul.mubr.msk.bf16.vlgmr.msra.gmra.mxu1 %vm625_vm3, %v744_v18 }
 0x1c6   : > { %1751 = vmatprep.mubr.msk.bf16.mxu1 %vm2204_vm0, %v2203_v0  ;;  %1750 = vmatpush3.bf16.msra.mxu1 %v861_v1 }
 0x1c7   : > { %1761 = vmatprep.subr.bf16.mxu1 %v2203_v0 }
 0x1ef   : > { %v521_v19 = vpop.xlane.xlu1 %520 }
 0x1f0   : > { %522 = vxpose.xlu0.b32.start.end [1/1] (short) (narrow) %v521_v19, 8 }
 0x26c   : > { %v538_v21 = vpop.trf.xlu0 }
 0x26d   : > { %vm672_vm4 = vcmp.gt.f32.partialorder %v538_v21, 0.5 }
 0x26e   : > { %v673_v25 = vsel %vm672_vm4, 1, %v2208_v24 }
 0x26f   : > { %v2468_v26 = vrot.slane %v673_v25, %v676_v23 }
 0x271   : > { %vm678_vm5 = vcmp.eq.s32.totalorder %v2468_v26, 1 }
 0x27d   : > { %v666_v27 = vpop.f32.mrf.mxu1 }
 0x27e   : > { %v679_v28 = vsel %vm678_vm5, -1e+09, %v666_v27 }
 0x27f   : > { %v1729_v29 = vpop.f32.mrf.mxu1  ;;  %v680_v30 = vsel %vm625_vm3, %v679_v28, -inf }
 0x280   : > { %681 = vmax.xlane.f32.xlu0 %v680_v30 }
 0x281   : > { %v669_v31 = vpop.f32.mrf.mxu1 }
 0x283   : > { %v1730_v32 = vpop.f32.mrf.mxu1 }
 0x285   : > { %v787_v33 = vpop.f32.mrf.mxu1 }
 0x286   : > { %v793_v34 = vsel %vm678_vm5, -1e+09, %v787_v33 }
 0x287   : > { %v1741_v35 = vpop.f32.mrf.mxu1  ;;  %v794_v36 = vsel %vm625_vm3, %v793_v34, -inf }
 0x288   : > { %795 = vmax.xlane.f32.xlu1 %v794_v36 }
 0x289   : > { %v790_v37 = vpop.f32.mrf.mxu1 }
 0x28b   : > { %v1742_v38 = vpop.f32.mrf.mxu1 }
 0x296   : > { %1012 = vrot.lane.b32.xlu0 %v2449_v9, %s2209_s16  ;;  %s2217_s16 = smov [#allocation13]  }
 0x299   : > { %692 = vrot.lane.b32.xlu1 %v2449_v9, %s2210_s19  ;;  %s2121_s19 = sshll.u32 %s2217_s16, 4  ;;  %s2122_s19 = int_to_ptr.vmem [resolvable:$false] %s2121_s19 }
 0x309   : > { %v682_v39 = vpop.xlane.xlu0 %681 }
 0x30a   : > { %v683_v40 = vsub.f32 %v679_v28, %v682_v39 }
 0x30c   : > { %v684_v41 = vmul.f32 1.442695, %v683_v40 }
 0x30d   : > { %v1013_v2 = vpop.permute.xlu0 %1012 }
 0x30e   : > { %1941 = vpow2.f32 %v684_v41  ;;  %v1018_v7 = vsel %vm697_vm6, %v1013_v2, 0 }
 0x311   : > { %v796_v42 = vpop.xlane.xlu1 %795 }
 0x312   : > { %v797_v43 = vsub.f32 %v793_v34, %v796_v42 }
 0x314   : > { %v798_v44 = vmul.f32 1.442695, %v797_v43 }
 0x315   : > { %v693_v45 = vpop.permute.xlu1 %692 }
 0x316   : > { %1943 = vpow2.f32 %v798_v44  ;;  %v699_v46 = vsel %vm697_vm6, %v693_v45, 0 }
 0x317   : > { %1732 = vmatpush3.bf16.msra.mxu0 %v699_v46 }
 0x318   : > { %1743 = vmatprep.subr.bf16.mxu0 %v2203_v0 }
 0x31b   : > { %v1942_v47 = vpop.eup %1941 }
 0x31c   : > { %v686_v48 = vsel %vm625_vm3, %v1942_v47, 0.0 }
 0x31d   : > { %687 = vadd.xlane.f32.xlu1 %v686_v48 }
 0x323   : > { %v1944_v49 = vpop.eup %1943 }
 0x324   : > { %v800_v50 = vsel %vm625_vm3, %v1944_v49, 0.0 }
 0x325   : > { %801 = vadd.xlane.f32.xlu1 %v800_v50 }
 0x336   : > { %806 = vrot.lane.b32.xlu1 %v2449_v9, %s2211_s2 }
 0x33a   : > { %951 = vrot.lane.b32.xlu1 %v2449_v9, %s2212_s17 }
 0x33e   : > { %949 = vrot.lane.b32.xlu1 %v2449_v9, %s2213_s20  ;;  %s1679_s20 = sshll.u32 %s2309_s29, 7  ;;  %s2123_s29 = scalar_lea.vmem %s2122_s19, 256 }
 0x3a6   : > { %v688_v51 = vpop.xlane.xlu1 %687 }
 0x3a7   : > { %1945 = vrcp.f32 %v688_v51 }
 0x3ae   : > { %v802_v52 = vpop.xlane.xlu1 %801 }
 0x3af   : > { %1947 = vrcp.f32 %v802_v52 }
 0x3b2   : > { %v807_v55 = vpop.permute.xlu1 %806 }
 0x3b3   : > { %v812_v57 = vsel %vm697_vm6, %v807_v55, 0 }
 0x3b4   : > { %v1946_v53 = vpop.eup %1945 }
 0x3b5   : > { %v690_v54 = vmul.f32 %v1946_v53, %v1942_v47  ;;  %v1657_v47 = vld [vmem:[%s2629_s3 + $0x8] sm:$0xf] }
 0x3b6   : > { %v952_v11 = vpop.permute.xlu1 %951  ;;  %v1067_v48 = vsel %vm697_vm6, %v1657_v47, 0 }
 0x3b7   : > { %v691_v56 = vpack.c.bf16 %v690_v54, %v690_v54  ;;  %v957_v15 = vsel %vm625_vm3, %v952_v11, 0 }
 0x3b9   : > { %1734 = vmatmul.mubr.msk.bf16.vlgmr.msra.gmra.mxu0 %vm625_vm3, %v691_v56 }
 0x3ba   : > { %1744 = vmatpush3.bf16.msra.mxu0 %v812_v57  ;;  %1745 = vmatprep.mubr.msk.bf16.mxu0 %vm2204_vm0, %v2203_v0  ;;  %v950_v18 = vpop.permute.xlu1 %949 }
 0x3bb   : > { %1755 = vmatprep.subr.bf16.mxu0 %v2203_v0 }
 0x3bc   : > { %v1948_v58 = vpop.eup %1947 }
 0x3bd   : > { %v804_v60 = vmul.f32 %v1948_v58, %v1944_v49 }
 0x3bf   : > { %v805_v61 = vpack.c.bf16 %v804_v60, %v804_v60 }
 0x3c1   : > { %1746 = vmatmul.mubr.msk.bf16.vlgmr.msra.gmra.mxu0 %vm625_vm3, %v805_v61 }
 0x3c2   : > { %1756 = vmatpush3.bf16.msra.mxu0 %v907_v62  ;;  %1757 = vmatprep.mubr.msk.bf16.mxu0 %vm2204_vm0, %v2203_v0 }
 0x3c3   : > { %1767 = vmatprep.subr.bf16.mxu0 %v2203_v0 }
 0x479   : > { %v735_v4 = vpop.f32.mrf.mxu0 }
 0x47a   : > { %v741_v5 = vpack.c.bf16 %v735_v4, %v735_v4  ;;  %v1661_v4 = vld [vmem:[%s2629_s3 + $0xc] sm:$0xf] }
 0x47b   : > { %v1735_v6 = vpop.f32.mrf.mxu0 }
 0x47c   : > { %1758 = vmatmul.mubr.msk.bf16.vlgmr.msra.gmra.mxu0 %vm625_vm3, %v741_v5  ;;  %v1228_v6 = vsel %vm697_vm6, %v1661_v4, 0 }
 0x47d   : > { %1768 = vmatpush3.bf16.msra.mxu0 %v1018_v7  ;;  %v738_v8 = vpop.f32.mrf.mxu0  ;;  %1769 = vmatprep.mubr.msk.bf16.mxu0 %vm2204_vm0, %v2203_v0 }
 0x47e   : > { %1779 = vmatprep.subr.bf16.mxu0 %v2203_v0 }
 0x47f   : > { %v1736_v10 = vpop.f32.mrf.mxu0 }
 0x481   : > { %v848_v12 = vpop.f32.mrf.mxu0 }
 0x482   : > { %v854_v13 = vpack.c.bf16 %v848_v12, %v848_v12 }
 0x483   : > { %v1747_v14 = vpop.f32.mrf.mxu0 }
 0x484   : > { %1752 = vmatmul.mubr.msk.bf16.vlgmr.msra.gmra.mxu1 %vm625_vm3, %v854_v13 }
 0x485   : > { %1762 = vmatpush3.bf16.xpose.msra.mxu1 %v957_v15  ;;  %v851_v16 = vpop.f32.mrf.mxu0  ;;  %1763 = vmatprep.mubr.msk.bf16.mxu1 %vm2204_vm0, %v2203_v0 }
 0x486   : > { %1773 = vmatprep.subr.bf16.mxu1 %v2203_v0 }
 0x487   : > { %v1748_v17 = vpop.f32.mrf.mxu0 }
 0x48c   : > { %1764 = vmatmul.mubr.msk.bf16.vlgmr.msra.gmra.mxu1 %vm625_vm3, %v950_v18 }
 0x48d   : > { %1775 = vmatprep.mubr.msk.bf16.mxu1 %vm2204_vm0, %v2203_v0  ;;  %1774 = vmatpush3.bf16.msra.mxu1 %v1067_v48  ;;  %v1939_v48 = vld [vmem:[%s2635_s9 + $0x8] sm:$0xff]  }
 0x48e   : > { %1785 = vmatprep.subr.bf16.mxu1 %v2203_v0 }
 0x53c   : > { %v943_v19 = vpop.f32.mrf.mxu0 }
 0x53e   : > { %v1759_v20 = vpop.f32.mrf.mxu0 }
 0x540   : > { %v946_v21 = vpop.f32.mrf.mxu0 }
 0x541   : > { %v1663_v21 = vld [vmem:[#allocation5] ss:$0 sm:$0xff] }
 0x542   : > { %v1760_v22 = vpop.f32.mrf.mxu0 }
 0x544   : > { %v897_v23 = vpop.f32.mrf.mxu1 }
 0x545   : > { %v2517_v24 = vadd.f32 %v943_v19, %v897_v23 }
 0x546   : > { %v1753_v25 = vpop.f32.mrf.mxu1 }
 0x548   : > { %v900_v27 = vpop.f32.mrf.mxu1 }
 0x54a   : > { %v1754_v28 = vpop.f32.mrf.mxu1 }
 0x54c   : > { %v993_v29 = vpop.f32.mrf.mxu1 }
 0x54d   : > { %v999_v30 = vsel %vm678_vm5, -1e+09, %v993_v29 }
 0x54e   : > { %v1765_v31 = vpop.f32.mrf.mxu1  ;;  %v1000_v32 = vsel %vm625_vm3, %v999_v30, -inf }
 0x54f   : > { %1001 = vmax.xlane.f32.xlu1 %v1000_v32 }
 0x550   : > { %v996_v33 = vpop.f32.mrf.mxu1 }
 0x552   : > { %v1766_v34 = vpop.f32.mrf.mxu1 }
 0x5d8   : > { %v1002_v35 = vpop.xlane.xlu1 %1001 }
 0x5d9   : > { %v1003_v36 = vsub.f32 %v999_v30, %v1002_v35  ;;  %v1935_v35 = vld [vmem:[#allocation10 + $0x8] sm:$0xff]  }
 0x5db   : > { %v1004_v37 = vmul.f32 1.442695, %v1003_v36  ;;  %v1936_v36 = vld [vmem:[#allocation10] sm:$0xff]  }
 0x5dd   : > { %1949 = vpow2.f32 %v1004_v37  ;;  %v1938_v37 = vld [vmem:[%s2635_s9 + $0x10] sm:$0xff]  }
 0x5ea   : > { %v1950_v38 = vpop.eup %1949 }
 0x5eb   : > { %v1006_v39 = vsel %vm625_vm3, %v1950_v38, 0.0 }
 0x5ec   : > { %1007 = vadd.xlane.f32.xlu0 %v1006_v39 }
 0x602   : > { %1112 = vrot.lane.b32.xlu0 %v2449_v9, %s2214_s24  ;;  %s1505_s24 = scalar_lea.hbm %s2639_s13, %s1679_s20 }
 0x606   : > { %1110 = vrot.lane.b32.xlu0 %v2449_v9, %s2215_s21  ;;  %s1494_s21 = scalar_lea.sflag [#allocation4], %s507_s27 }
 0x675   : > { %v1008_v40 = vpop.xlane.xlu0 %1007 }
 0x676   : > { %1951 = vrcp.f32 %v1008_v40 }
 0x679   : > { %v1113_v43 = vpop.permute.xlu0 %1112 }
 0x67a   : > { %v1118_v45 = vsel %vm625_vm3, %v1113_v43, 0 }
 0x67d   : > { %v1111_v46 = vpop.permute.xlu0 %1110 }
 0x683   : > { %v1952_v41 = vpop.eup %1951 }
 0x684   : > { %v1010_v42 = vmul.f32 %v1952_v41, %v1950_v38 }
 0x686   : > { %v1011_v44 = vpack.c.bf16 %v1010_v42, %v1010_v42  ;;  %v1664_v42 = vld [vmem:[#allocation7] ss:$0 sm:$0xff] }
 0x688   : > { %1770 = vmatmul.mubr.msk.bf16.vlgmr.msra.gmra.mxu0 %vm625_vm3, %v1011_v44  ;;  %v1665_v44 = vld [vmem:[#allocation8] ss:$0 sm:$0xff] }
 0x689   : > { %1780 = vmatpush3.bf16.xpose.msra.mxu0 %v1118_v45  ;;  %1781 = vmatprep.mubr.msk.bf16.mxu0 %vm2204_vm0, %v2203_v0 }
 0x68a   : > { %1791 = vmatprep.subr.bf16.mxu0 %v2203_v0 }
 0x690   : > { %1782 = vmatmul.mubr.msk.bf16.vlgmr.msra.gmra.mxu0 %vm625_vm3, %v1111_v46 }
 0x691   : > { %1793 = vmatprep.mubr.msk.bf16.mxu0 %vm2204_vm0, %v2203_v0  ;;  %1792 = vmatpush3.bf16.msra.mxu0 %v1228_v6 }
 0x692   : > { %1805 = vmatprep.subr.bf16.mxu0 %v2203_v0 }
 0x748   : > { %v1054_v49 = vpop.f32.mrf.mxu0 }
 0x749   : > { %v1060_v50 = vpack.c.bf16 %v1054_v49, %v1054_v49  ;;  %v1940_v49 = vld [vmem:[%s2635_s9] sm:$0xff]  }
 0x74a   : > { %v1771_v51 = vpop.f32.mrf.mxu0 }
 0x74b   : > { %1776 = vmatmul.mubr.msk.bf16.vlgmr.msra.gmra.mxu1 %vm625_vm3, %v1060_v50  ;;  %v1666_v50 = vld [vmem:[#allocation11] ss:$0 sm:$0xff] }
 0x74c   : > { %v1057_v52 = vpop.f32.mrf.mxu0  ;;  %1787 = vmatprep.mubr.msk.bf16.mxu1 %vm2204_vm0, %v2203_v0 }
 0x74e   : > { %v1772_v53 = vpop.f32.mrf.mxu0 }
 0x750   : > { %v1154_v54 = vpop.f32.mrf.mxu0 }
 0x751   : > { %v1160_v55 = vsel %vm678_vm5, -1e+09, %v1154_v54 }
 0x752   : > { %v1783_v56 = vpop.f32.mrf.mxu0  ;;  %v1161_v57 = vsel %vm625_vm3, %v1160_v55, -inf }
 0x753   : > { %1162 = vmax.xlane.f32.xlu0 %v1161_v57 }
 0x754   : > { %v1157_v58 = vpop.f32.mrf.mxu0 }
 0x755   : > { %v1670_v58 = vld [vmem:[%s2636_s10] ss:$0 sm:$0xff] }
 0x756   : > { %v1784_v59 = vpop.f32.mrf.mxu0 }
 0x7dc   : > { %v1163_v60 = vpop.xlane.xlu0 %1162 }
 0x7dd   : > { %v1164_v61 = vsub.f32 %v1160_v55, %v1163_v60 }
 0x7df   : > { %v1165_v62 = vmul.f32 1.442695, %v1164_v61 }
 0x7e1   : > { %1953 = vpow2.f32 %v1165_v62 }
 0x7ee   : > { %v1954_v63 = vpop.eup %1953 }
 0x7ef   : > { %v1167_v1 = vsel %vm625_vm3, %v1954_v63, 0.0 }
 0x7f0   : > { %1168 = vadd.xlane.f32.xlu1 %v1167_v1 }
 0x801   : > { %1173 = vrot.lane.b32.xlu1 %v2449_v9, %s2216_s14  ;;  %s1642_s14 = sshll.u32 %s507_s27, 3 }
 0x802   : > { %s509_s30 = scalar_lea.vmem [#allocation13], %s1642_s14 }
 0x803   : > { %s1507_s23 = sshll.u32 %s509_s30, 4  ;;  %s1508_s23 = int_to_ptr.vmem [resolvable:$true] %s1507_s23 }
 0x804   : > { %s2117_s15 = scalar_lea.vmem %s1508_s23, 128  ;;  %p2124_p6 = scmp.lt.s32.totalorder %s1508_s23, %s2122_s19 }
 0x805   : > { %p2118_p2 = scmp.ne.s32.totalorder %s1508_s23, %s2117_s15  ;;  %p2125_p10 = scmp.lt.s32.totalorder %s2123_s29, %s2117_s15 }
 0x807   : > { %p2119_p3 = pnand %p2118_p2, %p2669_p9  ;;  %p2126_p13 = por %p2125_p10, %p2124_p6 }
 0x809   : > { %p2120_p5 = pneg %p2119_p3 }
 0x80b   : > { %v1103_v2 = vpop.f32.mrf.mxu1  ;;  %p2127_p4 = pnand %p2126_p13, %p2120_p5 }
 0x80c   : > { %v1109_v26 = vadd.f32 %v1103_v2, %v2517_v24 }
 0x80d   : > { %v1777_v5 = vpop.f32.mrf.mxu1 }
 0x80f   : > { %v1106_v7 = vpop.f32.mrf.mxu1 }
 0x811   : > { %v1778_v8 = vpop.f32.mrf.mxu1 }
 0x879   : > { %v1169_v10 = vpop.xlane.xlu1 %1168 }
 0x87a   : > { %1955 = vrcp.f32 %v1169_v10 }
 0x87d   : > { %v1174_v11 = vpop.permute.xlu1 %1173 }
 0x87e   : > { %v1179_v9 = vsel %vm697_vm6, %v1174_v11, 0 }
 0x87f   : > { %1786 = vmatpush3.bf16.msra.mxu1 %v1179_v9  ;;  %v1676_v9 = vld [vmem:[%s2637_s11] ss:$0 sm:$0xff] }
 0x880   : > { %1797 = vmatprep.subr.bf16.mxu1 %v2203_v0 }
 0x887   : > { %v1956_v12 = vpop.eup %1955 }
 0x888   : > { %v1171_v13 = vmul.f32 %v1956_v12, %v1954_v63 }
 0x88a   : > { %v1172_v14 = vpack.c.bf16 %v1171_v13, %v1171_v13  ;;  %v1677_v13 = vld [vmem:[%s2638_s12] ss:$0 sm:$0xff] }
 0x88c   : > { %1788 = vmatmul.mubr.msk.bf16.vlgmr.msra.gmra.mxu1 %vm625_vm3, %v1172_v14 }
 0x88d   : > { %1801 = vmatprep.mubr.msk.bf16.mxu1 %vm2204_vm0, %v2203_v0  ;;  %1798 = vmatpush3.bf16.msra.mxu1 %v1935_v35 }
 0x88e   : > { %1799 = vmatprep.subr.bf16.mxu1 %v2203_v0 }
 0x891   : > { %1800 = vmatpush3.bf16.msra.mxu1 %v1936_v36 }
 0x94c   : > { %v1215_v15 = vpop.f32.mrf.mxu1 }
 0x94d   : > { %v1221_v16 = vpack.c.bf16 %v1215_v15, %v1215_v15 }
 0x94e   : > { %v1789_v17 = vpop.f32.mrf.mxu1 }
 0x94f   : > { %1794 = vmatmul.mubr.msk.bf16.vlgmr.msra.gmra.mxu0 %vm625_vm3, %v1221_v16 }
 0x950   : > { %v1218_v18 = vpop.f32.mrf.mxu1  ;;  %1813 = vmatprep.mubr.msk.bf16.mxu0 %vm2204_vm0, %v2203_v0 }
 0x952   : > { %v1790_v19 = vpop.f32.mrf.mxu1 }
 0xa0f   : > { %v1264_v20 = vpop.f32.mrf.mxu0 }
 0xa10   : > { %v1270_v22 = vadd.f32 %v1264_v20, %v1109_v26 }
 0xa11   : > { %v1795_v23 = vpop.f32.mrf.mxu0 }
 0xa12   : > { %v1278_v24 = vadd.f32 %v1663_v21, %v1270_v22 }
 0xa13   : > { %v1267_v25 = vpop.f32.mrf.mxu0 }
 0xa14   : > { %v1279_v27 = vadd.f32 %v1278_v24, %v2440_v3  ;;  %v1937_v3 = vld [vmem:[%s2635_s9 + $0x18] sm:$0xff]  }
 0xa15   : > { %v1796_v28 = vpop.f32.mrf.mxu0  ;;  %1806 = vmatpush3.bf16.msra.mxu0 %v1937_v3 }
 0xa16   : > { %v1282_v29 = vsel %vm518_vm1, %v1279_v27, 0.0  ;;  %1807 = vmatprep.subr.bf16.mxu0 %v2203_v0 }
 0xa17   : > { %1283 = vadd.xlane.f32.xlu1 %v1282_v29 }
 0xa19   : > { %1808 = vmatpush3.bf16.msra.mxu0 %v1938_v37 }
 0xa1a   : > { %1809 = vmatprep.subr.bf16.mxu0 %v2203_v0 }
 0xa1d   : > { %1810 = vmatpush3.bf16.msra.mxu0 %v1939_v48 }
 0xa1e   : > { %1811 = vmatprep.subr.bf16.mxu0 %v2203_v0 }
 0xa21   : > { %1812 = vmatpush3.bf16.msra.mxu0 %v1940_v49 }
 0xaa0   : > { %v1284_v30 = vpop.xlane.xlu1 %1283 }
 0xaa1   : > { %v1286_v31 = vmul.f32 0.03125, %v1284_v30 }
 0xaa3   : > { %v1287_v32 = vsub.f32 %v1279_v27, %v1286_v31 }
 0xaa5   : > { %v1288_v33 = vmul.f32 %v1287_v32, %v1287_v32 }
 0xaa7   : > { %v1289_v34 = vsel %vm518_vm1, %v1288_v33, 0.0 }
 0xaa8   : > { %1290 = vadd.xlane.f32.xlu0 %v1289_v34 }
 0xb31   : > { %v1291_v38 = vpop.xlane.xlu0 %1290 }
 0xb32   : > { %v1292_v39 = vmul.f32 0.03125, %v1291_v38 }
 0xb34   : > { %v1293_v40 = vadd.f32 1e-05, %v1292_v39 }
 0xb36   : > { %1957 = vrsqrt.f32 %v1293_v40 }
 0xb43   : > { %v1958_v41 = vpop.eup %1957 }
 0xb44   : > { %v1295_v43 = vmul.f32 %v1958_v41, %v1287_v32 }
 0xb46   : > { %v1302_v45 = vmul.f32 %v1664_v42, %v1295_v43 }
 0xb48   : > { %v1309_v46 = vadd.f32 %v1665_v44, %v1302_v45 }
 0xb4a   : > { %v1310_v47 = vpack.c.bf16 %v1309_v46, %v1309_v46 }
 0xb4c   : > { %1802 = vmatmul.mubr.msk.bf16.vlgmr.msra.gmra.mxu1 %vm518_vm1, %v1310_v47 }
 0xc0c   : > { %v1371_v51 = vpop.f32.mrf.mxu1 }
 0xc0d   : > { %v1372_v52 = vadd.f32 %v1666_v50, %v1371_v51 }
 0xc0e   : > { %v1803_v53 = vpop.f32.mrf.mxu1 }
 0xc0f   : > { %v1377_v54 = vmax.f32 %v1372_v52, 0.0 }
 0xc10   : > { %v1374_v55 = vpop.f32.mrf.mxu1 }
 0xc11   : > { %v1378_v56 = vpack.c.bf16 %v1377_v54, %v1377_v54 }
 0xc12   : > { %v1804_v57 = vpop.f32.mrf.mxu1 }
 0xc13   : > { %1814 = vmatmul.mubr.msk.bf16.vlgmr.msra.gmra.mxu0 %vm1418_vm7, %v1378_v56 }
 0xcd3   : > { %v1456_v0 = vpop.f32.mrf.mxu0 }
 0xcd4   : > { %v1457_v59 = vadd.f32 %v1670_v58, %v1456_v0 }
 0xcd5   : > { %v1815_v60 = vpop.f32.mrf.mxu0 }
 0xcd6   : > { %v1462_v61 = vadd.f32 %v1457_v59, %v1309_v46 }
 0xcd7   : > { %v1459_v62 = vpop.f32.mrf.mxu0 }
 0xcd8   : > { %v1465_v63 = vsel %vm518_vm1, %v1462_v61, 0.0 }
 0xcd9   : > { %1466 = vadd.xlane.f32.xlu0 %v1465_v63  ;;  %v1816_v1 = vpop.f32.mrf.mxu0 }
 0xd62   : > { %v1467_v2 = vpop.xlane.xlu0 %1466 }
 0xd63   : > { %v1468_v26 = vmul.f32 0.03125, %v1467_v2 }
 0xd65   : > { %v1469_v4 = vsub.f32 %v1462_v61, %v1468_v26 }
 0xd67   : > { %v1470_v5 = vmul.f32 %v1469_v4, %v1469_v4 }
 0xd69   : > { %v1471_v6 = vsel %vm518_vm1, %v1470_v5, 0.0 }
 0xd6a   : > { %1472 = vadd.xlane.f32.xlu0 %v1471_v6 }
 0xdf3   : > { %v1473_v7 = vpop.xlane.xlu0 %1472 }
 0xdf4   : > { %v1474_v8 = vmul.f32 0.03125, %v1473_v7 }
 0xdf6   : > { %v1475_v10 = vadd.f32 1e-05, %v1474_v8 }
 0xdf8   : > { %1959 = vrsqrt.f32 %v1475_v10 }
 0xe05   : > { %v1960_v11 = vpop.eup %1959 }
 0xe06   : > { %v1477_v12 = vmul.f32 %v1960_v11, %v1469_v4 }
 0xe08   : > { %v1484_v14 = vmul.f32 %v1676_v9, %v1477_v12 }
 0xe0a   : > { %v1491_v15 = vadd.f32 %v1677_v13, %v1484_v14 }
 0xe0c   : > { %1492 = vst.msk [vmem:[%s509_s30] sm:$0xff] %vm518_vm1, %v1491_v15 }
 0xe0d   : > { %2130 = shalt.err (!%p2127_p4)
}
 0xe0e   : > { %s2131_s14 = scalar_lea.hbm %s1505_s24, 128  ;;  %s2135_s17 = scalar_lea.hbm %s2639_s13, 256 }
 0xe0f   : > { %p2132_p7 = scmp.ne.s32.totalorder %s1505_s24, %s2131_s14  ;;  %p2136_p11 = scmp.lt.s32.totalorder %s1505_s24, %s2639_s13 }
 0xe10   : > { %p2137_p0 = scmp.lt.s32.totalorder %s2135_s17, %s2131_s14 }
 0xe11   : > { %p2133_p8 = pnand %p2132_p7, %p2669_p9 }
 0xe12   : > { %p2138_p1 = por %p2137_p0, %p2136_p11 }
 0xe13   : > { %p2134_p12 = pneg %p2133_p8 }
 0xe15   : > { %p2139_p2 = pnand %p2138_p1, %p2134_p12 }
 0xe17   : > { %2142 = shalt.err (!%p2139_p2)
}
 0xe18   : > { %1841 = dma.vmem_to_hbm [thread:$0]  (%p2669_p9), %s1508_s23, 128, %s1505_s24, %s1494_s21  }
 0xe19 PF: > { %s2670_s4 = sld [smem:[#allocation22_spill]]  ;;  %p1878_p3 = scmp.ge.s32.totalorder %s2193_s28, 2 }
 0xe1a   : > { %s1519_s22 = sand.u32 1, %s2181_s25  }
 0xe1b   : > { %s1520_s15 = scalar_lea.sflag [#allocation4], %s1519_s22 }
 0xe1f   : > { %p2671_p5 = scmp.ne.s32.totalorder %s2670_s4, 0 }
 0xe21   : > { %p1863_p6 = pnand %p1878_p3, %p2671_p5 }
 0xe23   : > { %p1864_p10 = pneg %p1863_p6 }
 0xe25   : > { %2176 = dma.done.wait (%p1864_p10), %s1520_s15, 128  }
 0xe26   : > { %2178 = vsyncadd (%p1864_p10), %s1520_s15, 4294967168  ;;  %s2672_s28 = sld [smem:[#allocation20_spill]]  ;;  %s2675_s25 = smov %s2185_s26 }
 0xe27   : > { %s2673_s16 = sld [smem:[#allocation19_spill]] }
 0xe28   : > { %s2674_s27 = sld [smem:[#allocation21_spill]] }
 0xe2c   : > { %p27_p13 = scmp.ge.s32.totalorder %s2672_s28, 4  }
 0xe2d   : > { %s2676_s26 = smov %s2673_s16 }
 0xe2e   :  { %29 = sbr.rel (!%p27_p13) target bundleno = 10 (0xa), region = 135 }
 0xe33   :  { %1525 = vsyncpa [#allocation3], 1 }
 0xe34   :  { %1527 = vsyncpa [#allocation3 + $0x1], 1 }
 0xe35   :  { %1528 = vsyncpa [#allocation6], 1 }
 0xe36   :  { %1529 = vsyncpa [#allocation9], 1 }
 0xe37   :  { %1530 = vsyncpa [#allocation12], 1 }
 0xe38   :  { %1531 = vsyncpa [#allocation4], 1 }
 0xe39   :  { %1533 = vsyncpa [#allocation4 + $0x1], 1 }

</bundles_post_ra>
